<compile_context>
chip_gen: v7x
topology: tpu7x:2x2x1
jax: 0.10.0
libtpu: 0.0.40
codegen_flags: <defaults>
</compile_context>

<pallas_src>
import jax
import jax.numpy as jnp
from jax.experimental import pallas as pl
from jax.experimental.pallas import tpu as pltpu


def _add_pos_kernel(x_ref, pos_ref, out_ref):
    # x_ref/out_ref: (bb, C, hw_block) VMEM tiles; pos_ref: (C, hw_block),
    # broadcast over the (sub-)batch dim. Single dense, lane-wide store.
    out_ref[...] = (x_ref[...] + pos_ref[...][None]).astype(out_ref.dtype)


def _pick_hw_block(HW, C, itemsize, budget_bytes=24 * 1024 * 1024):
    """Largest 128-multiple divisor of HW (<= 2048) whose double-buffered
    x/out/pos tiles fit the VMEM budget; fall back to the full extent."""
    per_lane = 6 * C * itemsize        # 2x(x) + 2x(out) + 2x(pos) per lane col
    max_lanes = max(budget_bytes // max(per_lane, 1), 128)
    cands = [m for m in range(128, min(HW, 2048) + 1, 128)
             if HW % m == 0 and m <= max_lanes]
    return max(cands) if cands else HW


def position_embedding_learned_forward(x, row_embed, col_embed):
    """x: (B, 2F, H, W); row_embed/col_embed: (64, F) -> x + learned 2-D pos."""
    B, C, H, W = x.shape
    n_table, F = row_embed.shape
    assert col_embed.shape == (n_table, F)
    assert C == 2 * F, "channel dim must equal 2 * num_pos_feats"
    assert H <= n_table and W <= n_table, "H, W must fit the 64-row tables"
    HW = H * W
    itemsize = jnp.dtype(x.dtype).itemsize

    # Build the (C, HW) position slab once (exact gather, tiny vs. B*C*HW).
    x_emb = col_embed[:W]                                    # (W, F)
    y_emb = row_embed[:H]                                    # (H, F)
    pos = jnp.concatenate(
        [jnp.broadcast_to(x_emb[None, :, :], (H, W, F)),
         jnp.broadcast_to(y_emb[:, None, :], (H, W, F))],
        axis=-1)                                             # (H, W, 2F)
    pos = jnp.transpose(pos, (2, 0, 1)).reshape(C, HW).astype(x.dtype)

    # Free layout-preserving reshape of the two minor dims -> lane-dense tiles.
    x3 = x.reshape(B, C, HW)

    # Tiling: tiny problems -> one grid step; otherwise block the flattened
    # spatial axis (128-multiples) and keep the batch axis innermost so the
    # pos block index stays constant across it (no re-DMA of the pos tile).
    total_bytes = B * C * HW * itemsize
    if 2 * total_bytes <= 2 * 1024 * 1024:       # in + out comfortably tiny
        bb, hw_block = B, HW
    else:
        bb = 1
        hw_block = _pick_hw_block(HW, C, itemsize)
    grid = (HW // hw_block, B // bb)

    out3 = pl.pallas_call(
        _add_pos_kernel,
        out_shape=jax.ShapeDtypeStruct((B, C, HW), x.dtype),
        grid_spec=pltpu.PrefetchScalarGridSpec(
            num_scalar_prefetch=0,
            grid=grid,
            in_specs=[
                pl.BlockSpec((bb, C, hw_block), lambda q, b: (b, 0, q)),
                pl.BlockSpec((C, hw_block), lambda q, b: (0, q)),
            ],
            out_specs=pl.BlockSpec((bb, C, hw_block), lambda q, b: (b, 0, q)),
        ),
        compiler_params=pltpu.CompilerParams(
            dimension_semantics=("parallel", "arbitrary"),
            vmem_limit_bytes=32 * 1024 * 1024,
        ),
    )(x3, pos)

    return out3.reshape(B, C, H, W)


if __name__ == "__main__":
    # Small deterministic setup consistent with PositionEmbeddingLearned(32):
    # x is (B, 2*num_pos_feats, H, W).
    num_pos_feats = 32
    B, H, W = 2, 16, 16
    C = 2 * num_pos_feats

    key = jax.random.PRNGKey(0)
    k_row, k_col, k_x = jax.random.split(key, 3)

    # nn.Embedding default init ~ N(0, 1). Full-precision f32 weights — the
    # kernel's pos path is an exact gather + add, so no precision tricks needed.
    row_embed = jax.random.normal(k_row, (64, num_pos_feats), jnp.float32)
    col_embed = jax.random.normal(k_col, (64, num_pos_feats), jnp.float32)
    x = jax.random.normal(k_x, (B, C, H, W), dtype=jnp.float32)

    out = position_embedding_learned_forward(x, row_embed, col_embed)
    out = jax.block_until_ready(out)

    # Pure-JAX reference mirroring the PyTorch forward exactly.
    x_emb = col_embed[jnp.arange(W)]                     # (W, F)
    y_emb = row_embed[jnp.arange(H)]                     # (H, F)
    pos_ref = jnp.concatenate(
        [jnp.broadcast_to(x_emb[None, :, :], (H, W, num_pos_feats)),
         jnp.broadcast_to(y_emb[:, None, :], (H, W, num_pos_feats))],
        axis=-1)                                         # (H, W, 2F)
    pos_ref = jnp.transpose(pos_ref, (2, 0, 1))[None]    # (1, 2F, H, W)
    ref = x + pos_ref

    assert out.shape == (B, C, H, W)
    assert jnp.allclose(out, ref, atol=1e-6, rtol=1e-6), float(
        jnp.max(jnp.abs(out - ref)))
    print("KERNEL_OK")
</pallas_src>

<mosaic_0001>
module attributes {stable_mosaic.version = 11 : i64} {
  func.func @_add_pos_kernel(%arg0: i32, %arg1: i32, %arg2: memref<2x64x256xf32, #tpu.memory_space<vmem>>, %arg3: memref<64x256xf32, #tpu.memory_space<vmem>>, %arg4: memref<2x64x256xf32, #tpu.memory_space<vmem>>) attributes {dimension_semantics = [#tpu.dimension_semantics<parallel>, #tpu.dimension_semantics<arbitrary>], iteration_bounds = array<i64: 1, 1>, scalar_prefetch = 0 : i64, scratch_operands = 0 : i64, tpu.core_type = #tpu.core_type<tc>, window_params = [{transform_indices = @transform_0, window_bounds = array<i64: 2, 64, 256>}, {transform_indices = @transform_1, window_bounds = array<i64: 64, 256>}, {transform_indices = @transform_2, window_bounds = array<i64: 2, 64, 256>}]} {
    %c0 = arith.constant 0 : index
    %c0_0 = arith.constant 0 : index
    %c0_1 = arith.constant 0 : index
    %0 = vector.load %arg2[%c0, %c0_0, %c0_1] : memref<2x64x256xf32, #tpu.memory_space<vmem>>, vector<2x64x256xf32>
    %c0_2 = arith.constant 0 : index
    %c0_3 = arith.constant 0 : index
    %1 = vector.load %arg3[%c0_2, %c0_3] : memref<64x256xf32, #tpu.memory_space<vmem>>, vector<64x256xf32>
    %2 = vector.shape_cast %1 : vector<64x256xf32> to vector<1x64x256xf32>
    %3 = vector.broadcast %2 : vector<1x64x256xf32> to vector<2x64x256xf32>
    %4 = arith.addf %0, %3 : vector<2x64x256xf32>
    %c0_4 = arith.constant 0 : index
    %c0_5 = arith.constant 0 : index
    %c0_6 = arith.constant 0 : index
    %5 = vector.load %arg4[%c0_4, %c0_5, %c0_6] : memref<2x64x256xf32, #tpu.memory_space<vmem>>, vector<2x64x256xf32>
    tpu.vector_store %arg4[%c0_4, %c0_5, %c0_6], %4 {strides = array<i32>} : memref<2x64x256xf32, #tpu.memory_space<vmem>>, vector<2x64x256xf32>,
    return
  }
  func.func @transform_0(%arg0: i32, %arg1: i32) -> (i32, i32, i32) {
    %c0_i32 = arith.constant 0 : i32
    %c0_i32_0 = arith.constant 0 : i32
    return %arg1, %c0_i32, %arg0 : i32, i32, i32
  }
  func.func @transform_1(%arg0: i32, %arg1: i32) -> (i32, i32) {
    %c0_i32 = arith.constant 0 : i32
    %c0_i32_0 = arith.constant 0 : i32
    return %c0_i32, %arg0 : i32, i32
  }
  func.func @transform_2(%arg0: i32, %arg1: i32) -> (i32, i32, i32) {
    %c0_i32 = arith.constant 0 : i32
    %c0_i32_0 = arith.constant 0 : i32
    return %arg1, %c0_i32, %arg0 : i32, i32, i32
  }
}

</mosaic_0001>

<bundles_post_ra>
// kernel: tpu_custom_call.1
= control target key start
LH: loop header
LB: loop body
LE: loop exit
PB: predicated region body
PF: predicated region fallthrough
CT: control target
= control target key end

     0   :  { %7 = vsyncpa [#allocation3], 0  ;;  %s320_s0 = inlined_call_operand.hbm [shape: f32[2,64,256], index: 0, kind: input, shape index: {}]   ;;  %s321_s1 = inlined_call_operand.hbm [shape: f32[64,256], index: 1, kind: input, shape index: {}]   ;;  %s322_s2 = inlined_call_operand.hbm [shape: f32[2,64,256], index: 2, kind: output, shape index: {}]  }
   0x1   :  { %8 = vsyncpa [#allocation6], 0 }
   0x2   :  { %9 = vsyncpa [#allocation4], 0  ;;  %s247_s9 = smov [#allocation2]   ;;  %s175_s13 = scalar_lea.hbm %s320_s0, 4096 }
   0x3   :  { %s15_s10 = sshll.u32 %s247_s9, 4  ;;  %p176_p0 = scmp.ne.s32.totalorder %s320_s0, %s175_s13  ;;  %s16_s10 = int_to_ptr.vmem [resolvable:$true] %s15_s10 }
   0x4   :  { %p179_p1 = scmp.lt.u32.totalorder %s175_s13, %s320_s0 }
   0x6   :  { %p181_p2 = pnand %p179_p1, %p176_p0 }
   0x8   :  { %184 = shalt.err (!%p181_p2)
}
   0x9   :  { %s185_s18 = scalar_lea.vmem %s16_s10, 4096  ;;  %p190_p4 = scmp.lt.s32.totalorder %s16_s10, %s16_s10 }
   0xa   :  { %p186_p3 = scmp.ne.s32.totalorder %s16_s10, %s185_s18  ;;  %p191_p5 = scmp.lt.s32.totalorder %s185_s18, %s185_s18 }
   0xc   :  { %p192_p6 = por %p191_p5, %p190_p4 }
   0xe   :  { %p193_p7 = pnand %p192_p6, %p186_p3 }
  0x10   :  { %196 = shalt.err (!%p193_p7)
}
  0x11   :  { %s248_s19 = smov 256   ;;  %s249_s20 = smov 16  }
  0x12   :  { %21 = dma.hbm_to_vmem [thread:$0]  %s320_s0, 4096, %s16_s10, [#allocation3], %s248_s19, %s248_s19, %s249_s20  }
  0x13   :  { %s250_s23 = smov [#allocation5]   ;;  %s197_s27 = scalar_lea.hbm %s321_s1, 2048 }
  0x14   :  { %s27_s24 = sshll.u32 %s250_s23, 4  ;;  %p198_p8 = scmp.ne.s32.totalorder %s321_s1, %s197_s27  ;;  %s28_s24 = int_to_ptr.vmem [resolvable:$true] %s27_s24 }
  0x15   :  { %p201_p9 = scmp.lt.u32.totalorder %s197_s27, %s321_s1 }
  0x17   :  { %p203_p10 = pnand %p201_p9, %p198_p8 }
  0x19   :  { %206 = shalt.err (!%p203_p10)
}
  0x1a   :  { %s207_s4 = scalar_lea.vmem %s28_s24, 2048  ;;  %p212_p12 = scmp.lt.s32.totalorder %s28_s24, %s28_s24 }
  0x1b   :  { %p208_p11 = scmp.ne.s32.totalorder %s28_s24, %s207_s4  ;;  %p213_p13 = scmp.lt.s32.totalorder %s207_s4, %s207_s4 }
  0x1d   :  { %p214_p0 = por %p213_p13, %p212_p12 }
  0x1f   :  { %p215_p1 = pnand %p214_p0, %p208_p11 }
  0x21   :  { %218 = shalt.err (!%p215_p1)
}
  0x22   :  { %33 = dma.hbm_to_vmem [thread:$0]  %s321_s1, 2048, %s28_s24, [#allocation6], %s248_s19, %s248_s19, %s249_s20  }
  0x23   :  { %241 = dma.done.wait [#allocation3], 4096  }
  0x24   :  { %242 = vsyncadd [#allocation3], 4294963200 }
  0x25   :  { %243 = dma.done.wait [#allocation6], 2048  }
  0x26   :  { %244 = vsyncadd [#allocation6], 4294965248  ;;  %v40_v0 = vld [vmem:[#allocation2] sm:$0xff]  ;;  %v41_v2 = vld [vmem:[#allocation2 + $0x8] sm:$0xff]  ;;  %s251_s1 = smov [#allocation7]  }
  0x27   :  { %v72_v1 = vld [vmem:[#allocation5] sm:$0xff]  ;;  %v297_v4 = vld [vmem:[#allocation5 + $0x8] sm:$0xff]  ;;  %v42_v5 = vld [vmem:[#allocation2 + $0x10] sm:$0xff]  ;;  %s157_s6 = sshll.u32 %s251_s1, 4  ;;  %s158_s6 = int_to_ptr.vmem [resolvable:$true] %s157_s6 }
  0x28   :  { %v88_v3 = vadd.f32 %v72_v1, %v40_v0  ;;  %v299_v6 = vld [vmem:[#allocation5 + $0x10] sm:$0xff]  ;;  %v89_v7 = vadd.f32 %v297_v4, %v41_v2  ;;  %v43_v9 = vld [vmem:[#allocation2 + $0x18] sm:$0xff]  ;;  %v44_v11 = vld [vmem:[#allocation2 + $0x20] sm:$0xff]  ;;  %s219_s7 = scalar_lea.vmem %s158_s6, 4096  ;;  %p224_p3 = scmp.lt.s32.totalorder %s158_s6, %s158_s6 }
  0x29   :  { %v90_v8 = vadd.f32 %v299_v6, %v42_v5  ;;  %v75_v10 = vld [vmem:[#allocation5 + $0x18] sm:$0xff]  ;;  %v76_v13 = vld [vmem:[#allocation5 + $0x20] sm:$0xff]  ;;  %v45_v14 = vld [vmem:[#allocation2 + $0x28] sm:$0xff]  ;;  %p220_p2 = scmp.ne.s32.totalorder %s158_s6, %s219_s7  ;;  %p225_p4 = scmp.lt.s32.totalorder %s219_s7, %s219_s7 }
  0x2a   :  { %120 = vst [vmem:[#allocation7] sm:$0xff] %v88_v3  ;;  %v91_v12 = vadd.f32 %v75_v10, %v43_v9  ;;  %v77_v15 = vld [vmem:[#allocation5 + $0x28] sm:$0xff]  ;;  %121 = vst [vmem:[#allocation7 + $0x8] sm:$0xff] %v89_v7  ;;  %v92_v16 = vadd.f32 %v76_v13, %v44_v11  ;;  %v46_v18 = vld [vmem:[#allocation2 + $0x30] sm:$0xff] }
  0x2b   :  { %122 = vst [vmem:[#allocation7 + $0x10] sm:$0xff] %v90_v8  ;;  %v93_v17 = vadd.f32 %v77_v15, %v45_v14  ;;  %v78_v19 = vld [vmem:[#allocation5 + $0x30] sm:$0xff]  ;;  %v47_v20 = vld [vmem:[#allocation2 + $0x38] sm:$0xff]  ;;  %v48_v23 = vld [vmem:[#allocation2 + $0x40] sm:$0xff]  ;;  %p226_p5 = por %p225_p4, %p224_p3 }
  0x2c   :  { %123 = vst [vmem:[#allocation7 + $0x18] sm:$0xff] %v91_v12  ;;  %v94_v21 = vadd.f32 %v78_v19, %v46_v18  ;;  %v79_v22 = vld [vmem:[#allocation5 + $0x38] sm:$0xff]  ;;  %v80_v24 = vld [vmem:[#allocation5 + $0x40] sm:$0xff]  ;;  %124 = vst [vmem:[#allocation7 + $0x20] sm:$0xff] %v92_v16 }
  0x2d   :  { %125 = vst [vmem:[#allocation7 + $0x28] sm:$0xff] %v93_v17  ;;  %v95_v25 = vadd.f32 %v79_v22, %v47_v20  ;;  %v96_v26 = vadd.f32 %v80_v24, %v48_v23  ;;  %v49_v27 = vld [vmem:[#allocation2 + $0x48] sm:$0xff]  ;;  %v50_v29 = vld [vmem:[#allocation2 + $0x50] sm:$0xff]  ;;  %v51_v32 = vld [vmem:[#allocation2 + $0x58] sm:$0xff]  ;;  %p227_p6 = pnand %p226_p5, %p220_p2 }
  0x2e   :  { %v81_v28 = vld [vmem:[#allocation5 + $0x48] sm:$0xff]  ;;  %126 = vst [vmem:[#allocation7 + $0x30] sm:$0xff] %v94_v21  ;;  %v82_v31 = vld [vmem:[#allocation5 + $0x50] sm:$0xff]  ;;  %v83_v33 = vld [vmem:[#allocation5 + $0x58] sm:$0xff] }
  0x2f   :  { %v97_v30 = vadd.f32 %v81_v28, %v49_v27  ;;  %127 = vst [vmem:[#allocation7 + $0x38] sm:$0xff] %v95_v25  ;;  %128 = vst [vmem:[#allocation7 + $0x40] sm:$0xff] %v96_v26  ;;  %v98_v34 = vadd.f32 %v82_v31, %v50_v29  ;;  %v99_v35 = vadd.f32 %v83_v33, %v51_v32  ;;  %v52_v36 = vld [vmem:[#allocation2 + $0x60] sm:$0xff]  ;;  %v53_v38 = vld [vmem:[#allocation2 + $0x68] sm:$0xff] }
  0x30   :  { %v84_v37 = vld [vmem:[#allocation5 + $0x60] sm:$0xff]  ;;  %v85_v40 = vld [vmem:[#allocation5 + $0x68] sm:$0xff]  ;;  %v54_v41 = vld [vmem:[#allocation2 + $0x70] sm:$0xff] }
  0x31   :  { %129 = vst [vmem:[#allocation7 + $0x48] sm:$0xff] %v97_v30  ;;  %v100_v39 = vadd.f32 %v84_v37, %v52_v36  ;;  %v86_v42 = vld [vmem:[#allocation5 + $0x70] sm:$0xff]  ;;  %130 = vst [vmem:[#allocation7 + $0x50] sm:$0xff] %v98_v34  ;;  %v101_v43 = vadd.f32 %v85_v40, %v53_v38  ;;  %v55_v45 = vld [vmem:[#allocation2 + $0x78] sm:$0xff] }
  0x32   :  { %131 = vst [vmem:[#allocation7 + $0x58] sm:$0xff] %v99_v35  ;;  %v102_v44 = vadd.f32 %v86_v42, %v54_v41  ;;  %v87_v46 = vld [vmem:[#allocation5 + $0x78] sm:$0xff]  ;;  %v56_v47 = vld [vmem:[#allocation2 + $0x80] sm:$0xff]  ;;  %v57_v50 = vld [vmem:[#allocation2 + $0x88] sm:$0xff] }
  0x33   :  { %132 = vst [vmem:[#allocation7 + $0x60] sm:$0xff] %v100_v39  ;;  %v103_v48 = vadd.f32 %v87_v46, %v55_v45  ;;  %v104_v49 = vadd.f32 %v72_v1, %v56_v47  ;;  %v58_v51 = vld [vmem:[#allocation2 + $0x90] sm:$0xff]  ;;  %v59_v52 = vld [vmem:[#allocation2 + $0x98] sm:$0xff]  ;;  %133 = vst [vmem:[#allocation7 + $0x68] sm:$0xff] %v101_v43  ;;  %v105_v53 = vadd.f32 %v297_v4, %v57_v50 }
  0x34   :  { %134 = vst [vmem:[#allocation7 + $0x70] sm:$0xff] %v102_v44  ;;  %v106_v54 = vadd.f32 %v299_v6, %v58_v51  ;;  %v107_v55 = vadd.f32 %v75_v10, %v59_v52  ;;  %v60_v56 = vld [vmem:[#allocation2 + $0xa0] sm:$0xff]  ;;  %v61_v57 = vld [vmem:[#allocation2 + $0xa8] sm:$0xff]  ;;  %v62_v58 = vld [vmem:[#allocation2 + $0xb0] sm:$0xff] }
  0x35   :  { %135 = vst [vmem:[#allocation7 + $0x78] sm:$0xff] %v103_v48  ;;  %136 = vst [vmem:[#allocation7 + $0x80] sm:$0xff] %v104_v49  ;;  %v108_v59 = vadd.f32 %v76_v13, %v60_v56  ;;  %v109_v60 = vadd.f32 %v77_v15, %v61_v57  ;;  %v110_v61 = vadd.f32 %v78_v19, %v62_v58  ;;  %v63_v62 = vld [vmem:[#allocation2 + $0xb8] sm:$0xff]  ;;  %v64_v63 = vld [vmem:[#allocation2 + $0xc0] sm:$0xff] }
  0x36   :  { %v65_v0 = vld [vmem:[#allocation2 + $0xc8] sm:$0xff]  ;;  %137 = vst [vmem:[#allocation7 + $0x88] sm:$0xff] %v105_v53  ;;  %138 = vst [vmem:[#allocation7 + $0x90] sm:$0xff] %v106_v54  ;;  %v111_v1 = vadd.f32 %v79_v22, %v63_v62  ;;  %v112_v2 = vadd.f32 %v80_v24, %v64_v63  ;;  %v66_v4 = vld [vmem:[#allocation2 + $0xd0] sm:$0xff] }
  0x37   :  { %139 = vst [vmem:[#allocation7 + $0x98] sm:$0xff] %v107_v55  ;;  %v113_v3 = vadd.f32 %v81_v28, %v65_v0  ;;  %v67_v5 = vld [vmem:[#allocation2 + $0xd8] sm:$0xff]  ;;  %v68_v6 = vld [vmem:[#allocation2 + $0xe0] sm:$0xff]  ;;  %140 = vst [vmem:[#allocation7 + $0xa0] sm:$0xff] %v108_v59  ;;  %v114_v7 = vadd.f32 %v82_v31, %v66_v4 }
  0x38   :  { %141 = vst [vmem:[#allocation7 + $0xa8] sm:$0xff] %v109_v60  ;;  %142 = vst [vmem:[#allocation7 + $0xb0] sm:$0xff] %v110_v61  ;;  %v115_v8 = vadd.f32 %v83_v33, %v67_v5  ;;  %v116_v9 = vadd.f32 %v84_v37, %v68_v6  ;;  %v69_v10 = vld [vmem:[#allocation2 + $0xe8] sm:$0xff]  ;;  %v70_v11 = vld [vmem:[#allocation2 + $0xf0] sm:$0xff] }
  0x39   :  { %v71_v12 = vld [vmem:[#allocation2 + $0xf8] sm:$0xff]  ;;  %143 = vst [vmem:[#allocation7 + $0xb8] sm:$0xff] %v111_v1  ;;  %144 = vst [vmem:[#allocation7 + $0xc0] sm:$0xff] %v112_v2  ;;  %v117_v13 = vadd.f32 %v85_v40, %v69_v10  ;;  %v118_v14 = vadd.f32 %v86_v42, %v70_v11 }
  0x3a   :  { %145 = vst [vmem:[#allocation7 + $0xc8] sm:$0xff] %v113_v3  ;;  %v119_v15 = vadd.f32 %v87_v46, %v71_v12  ;;  %146 = vst [vmem:[#allocation7 + $0xd0] sm:$0xff] %v114_v7 }
  0x3b   :  { %147 = vst [vmem:[#allocation7 + $0xd8] sm:$0xff] %v115_v8  ;;  %148 = vst [vmem:[#allocation7 + $0xe0] sm:$0xff] %v116_v9 }
  0x3c   :  { %149 = vst [vmem:[#allocation7 + $0xe8] sm:$0xff] %v117_v13  ;;  %150 = vst [vmem:[#allocation7 + $0xf0] sm:$0xff] %v118_v14 }
  0x3d   :  { %151 = vst [vmem:[#allocation7 + $0xf8] sm:$0xff] %v119_v15 }
  0x3e   :  { %230 = shalt.err (!%p227_p6)
}
  0x3f   :  { %s231_s10 = scalar_lea.hbm %s322_s2, 4096 }
  0x40   :  { %p232_p7 = scmp.ne.s32.totalorder %s322_s2, %s231_s10  ;;  %p235_p8 = scmp.lt.u32.totalorder %s231_s10, %s322_s2 }
  0x42   :  { %p237_p9 = pnand %p235_p8, %p232_p7 }
  0x44   :  { %240 = shalt.err (!%p237_p9)
}
  0x45   :  { %163 = dma.vmem_to_hbm [thread:$0]  %s158_s6, 4096, %s322_s2, [#allocation4], %s248_s19, %s248_s19, %s249_s20  }
  0x46   :  { %245 = dma.done.wait [#allocation4], 4096  }
  0x47   :  { %246 = vsyncadd [#allocation4], 4294963200 }
  0x48   :  { %167 = vsyncpa [#allocation3], 1 }
  0x49   :  { %168 = vsyncpa [#allocation6], 1 }
  0x4a   :  { %169 = vsyncpa [#allocation4], 1 }

</bundles_post_ra>
